<compile_context>
chip_gen: v7x
topology: tpu7x:2x2x1
jax: 0.10.0
libtpu: 0.0.40
codegen_flags: <defaults>
</compile_context>

<pallas_src>
import functools

import jax
import jax.numpy as jnp
from jax.experimental import pallas as pl
from jax.experimental.pallas import tpu as pltpu


# --------------------------------------------------------------------------- #
# Pass 1: fused conv1∘conv2 matmul + partial BatchNorm statistics.             #
# --------------------------------------------------------------------------- #
def _conv_stats_kernel(slab_ref, wf_ref, bf_ref, y2_ref, psum_ref, psq_ref):
    # Single bf16 MXU matmul with f32 accumulation, f32 bias add.
    y = jnp.dot(slab_ref[...], wf_ref[...],
                preferred_element_type=jnp.float32) + bf_ref[...]
    y2_ref[...] = y.astype(y2_ref.dtype)                     # bf16 staging store
    # Fused BN stats for this row block (replicated over 8 sublanes so the
    # stats block keeps an (8, 128)-aligned shape; the wrapper reads row 0).
    psum_ref[...] = jnp.broadcast_to(
        jnp.sum(y, axis=0, keepdims=True), psum_ref.shape)
    psq_ref[...] = jnp.broadcast_to(
        jnp.sum(y * y, axis=0, keepdims=True), psq_ref.shape)


# --------------------------------------------------------------------------- #
# Pass 2: elementwise BN apply + Mish (scale/shift precomputed in wrapper).    #
# --------------------------------------------------------------------------- #
def _bn_mish_kernel(y2_ref, scale_ref, shift_ref, out_ref):
    z = y2_ref[...].astype(jnp.float32) * scale_ref[...] + shift_ref[...]
    # Mish: z * tanh(softplus(z)) = z * t / (t + 2), t = e^z (e^z + 2).
    # Clamp at 20 (PyTorch softplus threshold); t/(t+2) == 1.0 there.
    e = jnp.exp(jnp.minimum(z, 20.0))
    t = e * (e + 2.0)
    out_ref[...] = z * (t * pl.reciprocal(t + 2.0, approx=True))


# --------------------------------------------------------------------------- #
# Sizing helpers                                                               #
# --------------------------------------------------------------------------- #
def _vmem_limit_bytes():
    """Per-generation scoped-VMEM budget (v7x: 64 MiB phys, v5e/v6e: 128 MiB)."""
    try:
        phys = int(pltpu.get_tpu_info().vmem_capacity_bytes)
    except Exception:
        phys = 64 * 1024 * 1024                       # conservative (v7x) fallback
    return max(32 * 1024 * 1024, min(phys * 3 // 4, 100 * 1024 * 1024))


def _pick_tiling(NH, kWCin, WCp, budget):
    """Largest row block (multiple of 8/16, <=512) fitting the VMEM budget,
    keeping >= 2 grid steps when possible (megacore / v7x two TensorCores)."""
    weight_bytes = 2 * (kWCin * WCp * 2)                       # bf16 w_fused, x2 buffers
    per_row = max(2 * (2 * kWCin + 2 * WCp),                   # pass 1: bf16 in + bf16 out
                  2 * (2 * WCp + 4 * WCp))                     # pass 2: bf16 in + f32 out
    usable = max(budget // 2 - weight_bytes, budget // 8)
    cap = min(512, max(8, usable // per_row), NH)
    cap = max(8, (cap // 8) * 8)
    if NH % 8 != 0:
        # TODO(synk): ragged NH fallback puts the whole problem in one block.
        return NH, 1
    step = 16 if NH % 16 == 0 else 8          # bf16 staging prefers 16-row sublane tiles
    cands = [t for t in range(step, cap + 1, step) if NH % t == 0]
    if not cands:
        return 8, NH // 8
    multi = [t for t in cands if NH // t >= 2]
    tm = max(multi) if multi else max(cands)
    return tm, NH // tm


# --------------------------------------------------------------------------- #
# Wrapper                                                                      #
# --------------------------------------------------------------------------- #
def encoder_block_with_passthrough(x_nchw, params, *, kernel_size, out_channels):
    """Returns (active_res, x) exactly like the PyTorch module's forward."""
    w_f = params["w_fused"]          # (k*W*Cin, WCp)   bf16 (or f32 accuracy mode)
    b_f = params["b_fused"]          # (1, WCp)         f32
    gamma = params["gamma"]          # (Cout,)          f32
    beta = params["beta"]            # (Cout,)          f32

    N, Cin, H, W = x_nchw.shape
    k = kernel_size
    p = k // 2
    Cout = out_channels
    kWCin = w_f.shape[0]
    WCp = w_f.shape[1]               # lane-padded W*Cout (multiple of 128)
    WCout = W * Cout
    NH = N * H
    mxu_dt = w_f.dtype

    # --- input prep: one fused XLA pass producing the lane-dense im2col slab
    # (H boundary zeros come from the pad; W boundary zeros are baked into the
    #  fused weight matrix).  Slab is staged in the MXU dtype (bf16) to halve
    #  its HBM traffic.
    x_nhwc = jnp.transpose(x_nchw.astype(jnp.float32), (0, 2, 3, 1))
    xp = jnp.pad(x_nhwc, ((0, 0), (p, p), (0, 0), (0, 0)))
    slab = jnp.concatenate(
        [xp[:, dh:dh + H].reshape(N, H, W * Cin) for dh in range(k)],
        axis=-1).reshape(NH, kWCin).astype(mxu_dt)

    vmem_limit = _vmem_limit_bytes()
    tm, g = _pick_tiling(NH, kWCin, WCp, vmem_limit)

    cparams = pltpu.CompilerParams(
        dimension_semantics=("parallel",),
        vmem_limit_bytes=vmem_limit)

    row_blk = lambda last: pl.BlockSpec((tm, last), lambda i: (i, 0))
    full = lambda shape: pl.BlockSpec(shape, lambda i, s=len(shape): (0,) * s)
    stats_blk = pl.BlockSpec((None, 8, WCp), lambda i: (i, 0, 0))

    # --- pass 1: fused conv matmul + per-block BN partial sums --------------- #
    y2, psum, psq = pl.pallas_call(
        _conv_stats_kernel,
        grid=(g,),
        in_specs=[row_blk(kWCin), full(w_f.shape), full(b_f.shape)],
        out_specs=(row_blk(WCp), stats_blk, stats_blk),
        out_shape=(jax.ShapeDtypeStruct((NH, WCp), mxu_dt),
                   jax.ShapeDtypeStruct((g, 8, WCp), jnp.float32),
                   jax.ShapeDtypeStruct((g, 8, WCp), jnp.float32)),
        compiler_params=cparams,
    )(slab, w_f, b_f)

    # --- global BN scale/shift: tiny plain-JAX reduction between the passes -- #
    count = float(N * H * W)
    tot_s = jnp.sum(psum[:, 0, :WCout], axis=0).reshape(W, Cout).sum(axis=0)
    tot_q = jnp.sum(psq[:, 0, :WCout], axis=0).reshape(W, Cout).sum(axis=0)
    mean = tot_s / count
    var = jnp.maximum(tot_q / count - mean * mean, 0.0)       # biased batch var
    scale_c = gamma * jax.lax.rsqrt(var + 1e-5)
    shift_c = beta - mean * scale_c
    padc = WCp - WCout
    scale_row = jnp.pad(jnp.tile(scale_c, W), (0, padc))[None, :]
    shift_row = jnp.pad(jnp.tile(shift_c, W), (0, padc))[None, :]

    # --- pass 2: pure elementwise BN apply + Mish ----------------------------- #
    out_flat = pl.pallas_call(
        _bn_mish_kernel,
        grid=(g,),
        in_specs=[row_blk(WCp), full((1, WCp)), full((1, WCp))],
        out_specs=row_blk(WCp),
        out_shape=jax.ShapeDtypeStruct((NH, WCp), jnp.float32),
        compiler_params=cparams,
    )(y2, scale_row, shift_row)

    # Un-fold the lane-dense output back to NCHW (single XLA layout pass).
    active = jnp.transpose(out_flat[:, :WCout].reshape(N, H, W, Cout), (0, 3, 1, 2))
    return active, x_nchw


def prepare_params(w1_oihw, b1, w2_oihw, b2, gamma, beta, *, width,
                   mxu_dtype=jnp.bfloat16):
    """Pack PyTorch-layout params into the fused lane-dense matrix the kernel uses.

    conv1 (k,1) and conv2 (1,k) have no nonlinearity between them, so their
    composition (including conv2's width 'same' padding and both biases) is
    folded into ONE matrix / bias row, built once per (weights, W).
    Set mxu_dtype=jnp.float32 for an accuracy mode (slower MXU path).
    """
    f32 = jnp.float32
    hi = jax.lax.Precision.HIGHEST
    Cout, Cin, k, _ = w1_oihw.shape
    p = k // 2
    W = width

    w1_k = jnp.transpose(w1_oihw[..., 0].astype(f32), (2, 1, 0))      # (k, Cin,  Cout)
    w2_k = jnp.transpose(w2_oihw[:, :, 0, :].astype(f32), (2, 1, 0))  # (k, Cout, Cout)

    eye_w = jnp.eye(W, dtype=f32)
    # W1_big[(dh*W + w)*Cin + ci, w*Cout + co] = w1_k[dh, ci, co]
    w1_big = jnp.einsum("uw,kio->kuiwo", eye_w, w1_k,
                        precision=hi).reshape(k * W * Cin, W * Cout)

    # shift[d, u, w] = 1  iff  u == w + d - p  (zero rows implement width padding)
    shift = (jnp.arange(W)[None, :, None]
             == jnp.arange(W)[None, None, :] + jnp.arange(k)[:, None, None] - p
             ).astype(f32)                                            # (k, W, W)
    # W2_big[u*Cout + ci, w*Cout + co] = sum_d shift[d,u,w] * w2_k[d, ci, co]
    w2_big = jnp.einsum("duw,dio->uiwo", shift, w2_k,
                        precision=hi).reshape(W * Cout, W * Cout)

    tile_row = lambda v: jnp.tile(v.astype(f32), W)[None, :]          # (1, W*Cout)

    # Fuse conv1∘conv2 (offline, f32) into a single matrix + bias row.
    w_fused = jnp.dot(w1_big, w2_big, precision=hi)                   # (k*W*Cin, W*Cout)
    b_fused = jnp.dot(tile_row(b1), w2_big, precision=hi) + tile_row(b2)

    # Lane-pad W*Cout to a multiple of 128 → unmasked lane-dense stores.
    WCout = W * Cout
    WCp = ((WCout + 127) // 128) * 128
    padc = WCp - WCout
    w_fused = jnp.pad(w_fused, ((0, 0), (0, padc)))
    b_fused = jnp.pad(b_fused, ((0, 0), (0, padc)))

    return dict(
        w_fused=w_fused.astype(mxu_dtype),      # bf16 MXU operand
        b_fused=b_fused,                        # f32 bias (added after f32 accum)
        gamma=gamma.astype(f32),
        beta=beta.astype(f32),
    )


def ref_forward(x, w1_oihw, b1, w2_oihw, b2, gamma, beta, k):
    """Pure-JAX reference mirroring the PyTorch forward (training-mode BN)."""
    p = k // 2
    dn = ("NCHW", "OIHW", "NCHW")
    y = jax.lax.conv_general_dilated(
        x, w1_oihw, (1, 1), ((p, p), (0, 0)), dimension_numbers=dn,
        precision=jax.lax.Precision.HIGHEST) + b1[None, :, None, None]
    y = jax.lax.conv_general_dilated(
        y, w2_oihw, (1, 1), ((0, 0), (p, p)), dimension_numbers=dn,
        precision=jax.lax.Precision.HIGHEST) + b2[None, :, None, None]
    mean = y.mean(axis=(0, 2, 3), keepdims=True)
    var = ((y - mean) ** 2).mean(axis=(0, 2, 3), keepdims=True)
    z = (y - mean) / jnp.sqrt(var + 1e-5)
    z = z * gamma[None, :, None, None] + beta[None, :, None, None]
    sp = jnp.where(z > 20.0, z, jnp.log1p(jnp.exp(jnp.minimum(z, 20.0))))
    return z * jnp.tanh(sp), x


if __name__ == "__main__":
    key = jax.random.PRNGKey(0)
    kx, k1, k2, k3, k4 = jax.random.split(key, 5)

    N, Cin, Cout, H, W, K = 2, 4, 8, 16, 16, 3
    x = jax.random.normal(kx, (N, Cin, H, W), jnp.float32)

    # Synthetic parameters in PyTorch layouts (conv weights OIHW).
    w1_oihw = jax.random.normal(k1, (Cout, Cin, K, 1), jnp.float32) * 0.1
    b1 = jax.random.normal(k2, (Cout,), jnp.float32) * 0.1
    w2_oihw = jax.random.normal(k3, (Cout, Cout, 1, K), jnp.float32) * 0.1
    b2 = jax.random.normal(k4, (Cout,), jnp.float32) * 0.1
    gamma = jnp.ones((Cout,), jnp.float32)          # BatchNorm2d defaults
    beta = jnp.zeros((Cout,), jnp.float32)

    params = prepare_params(w1_oihw, b1, w2_oihw, b2, gamma, beta, width=W)

    fwd = jax.jit(functools.partial(encoder_block_with_passthrough,
                                    kernel_size=K, out_channels=Cout))
    active, passthrough = fwd(x, params)
    jax.block_until_ready(active)

    assert active.shape == (N, Cout, H, W)
    assert passthrough.shape == x.shape
    assert bool(jnp.all(passthrough == x))

    ref_active, _ = ref_forward(x, w1_oihw, b1, w2_oihw, b2, gamma, beta, K)
    err = float(jnp.max(jnp.abs(active - ref_active)))
    # bf16 MXU operands + bf16 y2 staging: tolerance relaxed vs the f32 reference.
    assert err < 5e-2, f"max abs err vs reference: {err}"

    print("KERNEL_OK")
</pallas_src>

<mosaic_0001>
module attributes {stable_mosaic.version = 11 : i64} {
  func.func @_conv_stats_kernel(%arg0: i32, %arg1: memref<16x192xbf16, #tpu.memory_space<vmem>>, %arg2: memref<192x128xbf16, #tpu.memory_space<vmem>>, %arg3: memref<1x128xf32, #tpu.memory_space<vmem>>, %arg4: memref<16x128xbf16, #tpu.memory_space<vmem>>, %arg5: memref<1x8x128xf32, #tpu.memory_space<vmem>>, %arg6: memref<1x8x128xf32, #tpu.memory_space<vmem>>) attributes {dimension_semantics = [#tpu.dimension_semantics<parallel>], iteration_bounds = array<i64: 2>, scalar_prefetch = 0 : i64, scratch_operands = 0 : i64, tpu.core_type = #tpu.core_type<tc>, window_params = [{transform_indices = @transform_0, window_bounds = array<i64: 16, 192>}, {pipeline_mode = #tpu.pipeline_mode<synchronous>, transform_indices = @transform_1, window_bounds = array<i64: 192, 128>}, {pipeline_mode = #tpu.pipeline_mode<synchronous>, transform_indices = @transform_2, window_bounds = array<i64: 1, 128>}, {transform_indices = @transform_3, window_bounds = array<i64: 16, 128>}, {transform_indices = @transform_4, window_bounds = array<i64: 1, 8, 128>}, {transform_indices = @transform_5, window_bounds = array<i64: 1, 8, 128>}]} {
    %c0 = arith.constant 0 : index
    %c0_0 = arith.constant 0 : index
    %0 = vector.load %arg1[%c0, %c0_0] : memref<16x192xbf16, #tpu.memory_space<vmem>>, vector<16x192xbf16>
    %c0_1 = arith.constant 0 : index
    %c0_2 = arith.constant 0 : index
    %1 = vector.load %arg2[%c0_1, %c0_2] : memref<192x128xbf16, #tpu.memory_space<vmem>>, vector<192x128xbf16>
    %cst = arith.constant dense<0.000000e+00> : vector<16x128xf32>
    %2 = tpu.matmul %0, %1, %cst {dimension_numbers = #tpu.dot_dimension_numbers<[1], [0], [0], [1], [0, 0, 1, 1], [], []>} : vector<16x192xbf16>, vector<192x128xbf16>, vector<16x128xf32> -> vector<16x128xf32>
    %c0_3 = arith.constant 0 : index
    %c0_4 = arith.constant 0 : index
    %3 = vector.load %arg3[%c0_3, %c0_4] : memref<1x128xf32, #tpu.memory_space<vmem>>, vector<1x128xf32>
    %4 = vector.broadcast %3 : vector<1x128xf32> to vector<16x128xf32>
    %5 = arith.addf %2, %4 : vector<16x128xf32>
    %6 = arith.truncf %5 : vector<16x128xf32> to vector<16x128xbf16>
    %c0_5 = arith.constant 0 : index
    %c0_6 = arith.constant 0 : index
    %7 = vector.load %arg4[%c0_5, %c0_6] : memref<16x128xbf16, #tpu.memory_space<vmem>>, vector<16x128xbf16>
    tpu.vector_store %arg4[%c0_5, %c0_6], %6 {strides = array<i32>} : memref<16x128xbf16, #tpu.memory_space<vmem>>, vector<16x128xbf16>,
    %cst_7 = arith.constant dense<0.000000e+00> : vector<128xf32>
    %8 = vector.multi_reduction <add>, %5, %cst_7 [0] : vector<16x128xf32> to vector<128xf32>
    %9 = vector.shape_cast %8 : vector<128xf32> to vector<1x128xf32>
    %10 = vector.shape_cast %9 : vector<1x128xf32> to vector<1x128xf32>
    %11 = vector.broadcast %10 : vector<1x128xf32> to vector<8x128xf32>
    %c0_8 = arith.constant 0 : index
    %c0_9 = arith.constant 0 : index
    %c0_10 = arith.constant 0 : index
    %12 = vector.load %arg5[%c0_8, %c0_9, %c0_10] : memref<1x8x128xf32, #tpu.memory_space<vmem>>, vector<1x8x128xf32>
    %13 = vector.shape_cast %12 : vector<1x8x128xf32> to vector<8x128xf32>
    %14 = vector.shape_cast %11 : vector<8x128xf32> to vector<1x8x128xf32>
    tpu.vector_store %arg5[%c0_8, %c0_9, %c0_10], %14 {strides = array<i32>} : memref<1x8x128xf32, #tpu.memory_space<vmem>>, vector<1x8x128xf32>,
    %15 = arith.mulf %5, %5 : vector<16x128xf32>
    %cst_11 = arith.constant dense<0.000000e+00> : vector<128xf32>
    %16 = vector.multi_reduction <add>, %15, %cst_11 [0] : vector<16x128xf32> to vector<128xf32>
    %17 = vector.shape_cast %16 : vector<128xf32> to vector<1x128xf32>
    %18 = vector.shape_cast %17 : vector<1x128xf32> to vector<1x128xf32>
    %19 = vector.broadcast %18 : vector<1x128xf32> to vector<8x128xf32>
    %c0_12 = arith.constant 0 : index
    %c0_13 = arith.constant 0 : index
    %c0_14 = arith.constant 0 : index
    %20 = vector.load %arg6[%c0_12, %c0_13, %c0_14] : memref<1x8x128xf32, #tpu.memory_space<vmem>>, vector<1x8x128xf32>
    %21 = vector.shape_cast %20 : vector<1x8x128xf32> to vector<8x128xf32>
    %22 = vector.shape_cast %19 : vector<8x128xf32> to vector<1x8x128xf32>
    tpu.vector_store %arg6[%c0_12, %c0_13, %c0_14], %22 {strides = array<i32>} : memref<1x8x128xf32, #tpu.memory_space<vmem>>, vector<1x8x128xf32>,
    return
  }
  func.func @transform_0(%arg0: i32) -> (i32, i32) {
    %c0_i32 = arith.constant 0 : i32
    %c0_i32_0 = arith.constant 0 : i32
    return %arg0, %c0_i32 : i32, i32
  }
  func.func @transform_1(%arg0: i32) -> (i32, i32) {
    %c0_i32 = arith.constant 0 : i32
    %c0_i32_0 = arith.constant 0 : i32
    %c0_i32_1 = arith.constant 0 : i32
    return %c0_i32, %c0_i32_0 : i32, i32
  }
  func.func @transform_2(%arg0: i32) -> (i32, i32) {
    %c0_i32 = arith.constant 0 : i32
    %c0_i32_0 = arith.constant 0 : i32
    %c0_i32_1 = arith.constant 0 : i32
    return %c0_i32, %c0_i32_0 : i32, i32
  }
  func.func @transform_3(%arg0: i32) -> (i32, i32) {
    %c0_i32 = arith.constant 0 : i32
    %c0_i32_0 = arith.constant 0 : i32
    return %arg0, %c0_i32 : i32, i32
  }
  func.func @transform_4(%arg0: i32) -> (i32, i32, i32) {
    %c0_i32 = arith.constant 0 : i32
    %c0_i32_0 = arith.constant 0 : i32
    %c0_i32_1 = arith.constant 0 : i32
    return %arg0, %c0_i32, %c0_i32_0 : i32, i32, i32
  }
  func.func @transform_5(%arg0: i32) -> (i32, i32, i32) {
    %c0_i32 = arith.constant 0 : i32
    %c0_i32_0 = arith.constant 0 : i32
    %c0_i32_1 = arith.constant 0 : i32
    return %arg0, %c0_i32, %c0_i32_0 : i32, i32, i32
  }
}

module attributes {stable_mosaic.version = 11 : i64} {
  func.func @_bn_mish_kernel(%arg0: i32, %arg1: memref<16x128xbf16, #tpu.memory_space<vmem>>, %arg2: memref<1x128xf32, #tpu.memory_space<vmem>>, %arg3: memref<1x128xf32, #tpu.memory_space<vmem>>, %arg4: memref<16x128xf32, #tpu.memory_space<vmem>>) attributes {dimension_semantics = [#tpu.dimension_semantics<parallel>], iteration_bounds = array<i64: 2>, scalar_prefetch = 0 : i64, scratch_operands = 0 : i64, tpu.core_type = #tpu.core_type<tc>, window_params = [{transform_indices = @transform_0, window_bounds = array<i64: 16, 128>}, {pipeline_mode = #tpu.pipeline_mode<synchronous>, transform_indices = @transform_1, window_bounds = array<i64: 1, 128>}, {pipeline_mode = #tpu.pipeline_mode<synchronous>, transform_indices = @transform_2, window_bounds = array<i64: 1, 128>}, {transform_indices = @transform_3, window_bounds = array<i64: 16, 128>}]} {
    %c0 = arith.constant 0 : index
    %c0_0 = arith.constant 0 : index
    %0 = vector.load %arg1[%c0, %c0_0] : memref<16x128xbf16, #tpu.memory_space<vmem>>, vector<16x128xbf16>
    %1 = arith.extf %0 : vector<16x128xbf16> to vector<16x128xf32>
    %c0_1 = arith.constant 0 : index
    %c0_2 = arith.constant 0 : index
    %2 = vector.load %arg2[%c0_1, %c0_2] : memref<1x128xf32, #tpu.memory_space<vmem>>, vector<1x128xf32>
    %3 = vector.broadcast %2 : vector<1x128xf32> to vector<16x128xf32>
    %4 = arith.mulf %1, %3 : vector<16x128xf32>
    %c0_3 = arith.constant 0 : index
    %c0_4 = arith.constant 0 : index
    %5 = vector.load %arg3[%c0_3, %c0_4] : memref<1x128xf32, #tpu.memory_space<vmem>>, vector<1x128xf32>
    %6 = vector.broadcast %5 : vector<1x128xf32> to vector<16x128xf32>
    %7 = arith.addf %4, %6 : vector<16x128xf32>
    %cst = arith.constant 2.000000e+01 : f32
    %8 = vector.broadcast %cst : f32 to vector<16x128xf32>
    %9 = arith.minimumf %7, %8 : vector<16x128xf32>
    %10 = math.exp %9 : vector<16x128xf32>
    %cst_5 = arith.constant 2.000000e+00 : f32
    %11 = vector.broadcast %cst_5 : f32 to vector<16x128xf32>
    %12 = arith.addf %10, %11 : vector<16x128xf32>
    %13 = arith.mulf %10, %12 : vector<16x128xf32>
    %cst_6 = arith.constant 2.000000e+00 : f32
    %14 = vector.broadcast %cst_6 : f32 to vector<16x128xf32>
    %15 = arith.addf %13, %14 : vector<16x128xf32>
    %16 = tpu.reciprocal %15 {approx = true} : vector<16x128xf32> -> vector<16x128xf32>
    %17 = arith.mulf %13, %16 : vector<16x128xf32>
    %18 = arith.mulf %7, %17 : vector<16x128xf32>
    %c0_7 = arith.constant 0 : index
    %c0_8 = arith.constant 0 : index
    %19 = vector.load %arg4[%c0_7, %c0_8] : memref<16x128xf32, #tpu.memory_space<vmem>>, vector<16x128xf32>
    tpu.vector_store %arg4[%c0_7, %c0_8], %18 {strides = array<i32>} : memref<16x128xf32, #tpu.memory_space<vmem>>, vector<16x128xf32>,
    return
  }
  func.func @transform_0(%arg0: i32) -> (i32, i32) {
    %c0_i32 = arith.constant 0 : i32
    %c0_i32_0 = arith.constant 0 : i32
    return %arg0, %c0_i32 : i32, i32
  }
  func.func @transform_1(%arg0: i32) -> (i32, i32) {
    %c0_i32 = arith.constant 0 : i32
    %c0_i32_0 = arith.constant 0 : i32
    %c0_i32_1 = arith.constant 0 : i32
    return %c0_i32, %c0_i32_0 : i32, i32
  }
  func.func @transform_2(%arg0: i32) -> (i32, i32) {
    %c0_i32 = arith.constant 0 : i32
    %c0_i32_0 = arith.constant 0 : i32
    %c0_i32_1 = arith.constant 0 : i32
    return %c0_i32, %c0_i32_0 : i32, i32
  }
  func.func @transform_3(%arg0: i32) -> (i32, i32) {
    %c0_i32 = arith.constant 0 : i32
    %c0_i32_0 = arith.constant 0 : i32
    return %arg0, %c0_i32 : i32, i32
  }
}

</mosaic_0001>

<bundles_post_ra>
// kernel: tile.18
= control target key start
LH: loop header
LB: loop body
LE: loop exit
PB: predicated region body
PF: predicated region fallthrough
CT: control target
= control target key end

     0   :  { %s28_s0 = inlined_call_operand.vmem [shape: f32[8], index: 0, kind: input, shape index: {}]   ;;  %s29_s1 = inlined_call_operand.vmem [shape: f32[16,8], index: 1, kind: output, shape index: {}]  }
   0x1   :  { %v4_v0 = vld [vmem:[%s28_s0] ss:$0 sm:$0xff] }
   0x2   :  { %5 = vst [vmem:[%s29_s1] sm:$0xff] %v4_v0  ;;  %8 = vst [vmem:[%s29_s1 + $0x8] sm:$0xff] %v4_v0 }

// kernel: encoder_block_with_passthrough.3
= control target key start
LH: loop header
LB: loop body
LE: loop exit
PB: predicated region body
PF: predicated region fallthrough
CT: control target
= control target key end

     0   :  { %s333_s12 = smov 0   ;;  %s360_s0 = inlined_call_operand.vmem [shape: bf16[32,128], index: 0, kind: input, shape index: {}]   ;;  %s361_s1 = inlined_call_operand.vmem [shape: f32[1,128], index: 1, kind: input, shape index: {}]   ;;  %s362_s2 = inlined_call_operand.vmem [shape: f32[1,128], index: 2, kind: input, shape index: {}]   ;;  %s363_s3 = inlined_call_operand.vmem [shape: f32[32,128], index: 3, kind: output, shape index: {}]  }
   0x1 LB: > { %s272_s13 = sadd.s32 4294967295, %s311_s12   ;;  %p276_p0 = scmp.ge.s32.totalorder %s311_s12, 1  ;;  %s311_s12 = sphi %s333_s12, %s13_s12  }
   0x2   : > { %p138_p1 = scmp.lt.s32.totalorder %s311_s12, 3 }
   0x4   : > { %p139_p2 = pnand %p276_p0, %p138_p1 }
   0x5   : > { %s277_s14 = sshll.u32 (!%p139_p2), %s272_s13, 1  ;;  %v281_v1 = vld [vmem:[%s361_s1] ss:$0 sm:$0xff] (!%p139_p2) }
   0x6   : > { %142 = sbr.rel (%p139_p2) target bundleno = 61 (0x3d), region = 32  ;;  %p163_p3 = scmp.lt.s32.totalorder (!%p139_p2), %s277_s14, 3  ;;  %v282_v4 = vld [vmem:[%s362_s2] ss:$0 sm:$0xff] (!%p139_p2) }
   0xd   : > { %s365_s14 = smov (!%p163_p3, %s277_s14), 3 }
   0xe   : > { %s278_s15 = sshll.u32 %s365_s14, 2  ;;  %s280_s23 = sshll.u32 %s365_s14, 3 }
   0xf   : > { %s166_s18 = scalar_lea.vmem %s360_s0, %s278_s15  ;;  %s172_s26 = scalar_lea.vmem %s363_s3, %s280_s23 }
  0x10   : > { %v286_v0 = vld [vmem:[%s166_s18] sm:$0xff]  }
  0x11   : > { %v287_v2 = vunpack.c.l.bf16 %v286_v0  ;;  %v288_v3 = vunpack.c.h.bf16 %v286_v0 }
  0x13   : > { %v185_v5 = vmul.f32 %v287_v2, %v281_v1  ;;  %v186_v6 = vmul.f32 %v288_v3, %v281_v1 }
  0x15   : > { %v194_v7 = vadd.f32 %v282_v4, %v185_v5  ;;  %v195_v8 = vadd.f32 %v282_v4, %v186_v6 }
  0x17   : > { %v196_v9 = vmin.f32 %v194_v7, 20.0  ;;  %v197_v10 = vmin.f32 %v195_v8, 20.0 }
  0x19   : > { %v198_v11 = vmul.f32 1.442695, %v196_v9  ;;  %v200_v12 = vmul.f32 1.442695, %v197_v10 }
  0x1b   : > { %297 = vpow2.f32 %v198_v11 }
  0x1c   : > { %299 = vpow2.f32 %v200_v12 }
  0x25   : > { %v298_v13 = vpop.eup %297 }
  0x26   : > { %v300_v14 = vpop.eup %299  ;;  %v202_v15 = vadd.f32 2.0, %v298_v13 }
  0x27   : > { %v203_v16 = vadd.f32 2.0, %v300_v14 }
  0x28   : > { %v204_v17 = vmul.f32 %v298_v13, %v202_v15 }
  0x29   : > { %v205_v18 = vmul.f32 %v300_v14, %v203_v16 }
  0x2a   : > { %v206_v19 = vadd.f32 2.0, %v204_v17 }
  0x2b   : > { %v207_v20 = vadd.f32 2.0, %v205_v18 }
  0x2c   : > { %301 = vrcp.f32 %v206_v19 }
  0x2d   : > { %303 = vrcp.f32 %v207_v20 }
  0x36   : > { %v302_v21 = vpop.eup %301 }
  0x37   : > { %v304_v22 = vpop.eup %303  ;;  %v210_v23 = vmul.f32 %v302_v21, %v204_v17 }
  0x38   : > { %v211_v24 = vmul.f32 %v304_v22, %v205_v18 }
  0x39   : > { %v212_v25 = vmul.f32 %v210_v23, %v194_v7 }
  0x3a   : > { %v213_v26 = vmul.f32 %v211_v24, %v195_v8 }
  0x3b   : > { %214 = vst [vmem:[%s172_s26] sm:$0xff] %v212_v25 }
  0x3c   : > { %215 = vst [vmem:[%s172_s26 + $0x8] sm:$0xff] %v213_v26 }
  0x3d PF: > { %s13_s12 = sadd.s32 1, %s311_s12  }
  0x3e   : > { %p10_p4 = scmp.ge.s32.totalorder %s13_s12, 4  }
  0x40   :  { %12 = sbr.rel (!%p10_p4) target bundleno = 1 (0x1), region = 62 }

// kernel: encoder_block_with_passthrough.2
= control target key start
LH: loop header
LB: loop body
LE: loop exit
PB: predicated region body
PF: predicated region fallthrough
CT: control target
= control target key end

     0   :  { %s661_s18 = smov 0   ;;  %s732_s0 = inlined_call_operand.vmem [shape: bf16[32,192], index: 0, kind: input, shape index: {}]   ;;  %s733_s1 = inlined_call_operand.vmem [shape: bf16[192,128], index: 1, kind: input, shape index: {}]   ;;  %s734_s2 = inlined_call_operand.vmem [shape: f32[1,128], index: 2, kind: input, shape index: {}]   ;;  %s735_s3 = inlined_call_operand.vmem [shape: bf16[32,128], index: 3, kind: output, shape index: {0}]   ;;  %s736_s4 = inlined_call_operand.vmem [shape: f32[2,8,128], index: 4, kind: output, shape index: {1}]   ;;  %s737_s5 = inlined_call_operand.vmem [shape: f32[2,8,128], index: 5, kind: output, shape index: {2}]  }
   0x1 LB: > { %s667_s19 = sadd.s32 4294967295, %s628_s18   ;;  %p562_p0 = scmp.ge.s32.totalorder %s628_s18, 1  ;;  %s628_s18 = sphi %s661_s18, %s16_s18  }
   0x2   : > { %p194_p1 = scmp.lt.s32.totalorder %s628_s18, 3 }
   0x4   : > { %p195_p2 = pnand %p562_p0, %p194_p1 }
   0x5   : > { %v607_v0 = vld [vmem:[%s733_s1] sm:$0xff] (!%p195_p2)   ;;  %v630_v1 = vmov (!%p195_p2), 0   ;;  %s563_s22 = sshll.u32 (!%p195_p2), %s667_s19, 1  ;;  %v608_v2 = vld [vmem:[%s733_s1 + $0x8] sm:$0xff] (!%p195_p2)   ;;  %v609_v3 = vld [vmem:[%s733_s1 + $0x10] sm:$0xff] (!%p195_p2)   ;;  %vm367_vm0 = vcmask (!%p195_p2), 523264  }
   0x6   : > { %198 = sbr.rel (%p195_p2) target bundleno = 287 (0x11f), region = 32  ;;  %371 = vmatprep.subr.bf16.mxu0 (!%p195_p2), %v630_v1  ;;  %p232_p3 = scmp.lt.s32.totalorder (!%p195_p2), %s563_s22, 3  ;;  %v610_v4 = vld [vmem:[%s733_s1 + $0x18] sm:$0xff] (!%p195_p2)   ;;  %v611_v6 = vld [vmem:[%s733_s1 + $0x20] sm:$0xff] (!%p195_p2)   ;;  %v612_v7 = vld [vmem:[%s733_s1 + $0x28] sm:$0xff] (!%p195_p2)  }
   0x7   : > { %372 = vmatpush1.bf16.msra.mxu0 (!%p195_p2), %v607_v0  ;;  %v613_v8 = vld [vmem:[%s733_s1 + $0x30] sm:$0xff] (!%p195_p2)   ;;  %v614_v9 = vld [vmem:[%s733_s1 + $0x38] sm:$0xff] (!%p195_p2)   ;;  %v615_v10 = vld [vmem:[%s733_s1 + $0x40] sm:$0xff] (!%p195_p2)   ;;  %p244_p4 = scmp.lt.s32.totalorder (!%p195_p2), %s667_s19, 1 }
   0x8   : > { %373 = vmatprep.subr.bf16.mxu0 (!%p195_p2), %v630_v1  ;;  %v616_v11 = vld [vmem:[%s733_s1 + $0x48] sm:$0xff] (!%p195_p2)   ;;  %v617_v12 = vld [vmem:[%s733_s1 + $0x50] sm:$0xff] (!%p195_p2)   ;;  %v618_v13 = vld [vmem:[%s733_s1 + $0x58] sm:$0xff] (!%p195_p2)  }
   0x9   : > { %v570_v15 = vld [vmem:[%s734_s2] ss:$0 sm:$0xff] (!%p195_p2) }
   0xb   : > { %374 = vmatpush1.bf16.msra.mxu0 (!%p195_p2), %v608_v2 }
   0xc   : > { %375 = vmatprep.subr.bf16.mxu0 (!%p195_p2), %v630_v1 }
   0xd   : > { %s739_s22 = smov (!%p232_p3, %s563_s22), 3  ;;  %s741_s19 = smov (!%p244_p4, %s667_s19), 1 }
   0xe   : > { %s590_s27 = sshll.u32 %s739_s22, 3  ;;  %s567_s29 = sshll.u32 %s739_s22, 2 }
   0xf   : > { %376 = vmatpush1.bf16.msra.mxu0 %v609_v3  ;;  %s236_s7 = scalar_lea.vmem %s732_s0, %s590_s27  ;;  %s242_s8 = scalar_lea.vmem %s735_s3, %s567_s29 }
  0x10   : > { %377 = vmatprep.subr.bf16.mxu0 %v630_v1  ;;  %v621_v5 = vld [vmem:[%s236_s7 + $0x4] ss:$8 sps:$4 sm:$0xff]   ;;  %v619_v14 = vld [vmem:[%s236_s7] ss:$8 sps:$4 sm:$0xff]   ;;  %s568_s22 = sshll.u32 %s741_s19, 3 }
  0x11   : > { %585 = vmatprep.mubr.msk.bf16.mxu0 %vm367_vm0, %v621_v5  ;;  %s247_s10 = scalar_lea.vmem %s736_s4, %s568_s22  ;;  %s251_s13 = scalar_lea.vmem %s737_s5, %s568_s22 }
  0x13   : > { %378 = vmatpush1.bf16.msra.mxu0 %v610_v4 }
  0x14   : > { %379 = vmatprep.subr.bf16.mxu0 %v630_v1 }
  0x17   : > { %380 = vmatpush1.bf16.msra.mxu0 %v611_v6 }
  0x18   : > { %381 = vmatprep.subr.bf16.mxu0 %v630_v1 }
  0x1b   : > { %382 = vmatpush1.bf16.msra.mxu0 %v612_v7 }
  0x1c   : > { %383 = vmatprep.subr.bf16.mxu0 %v630_v1 }
  0x1f   : > { %384 = vmatpush1.bf16.msra.mxu0 %v613_v8 }
  0x20   : > { %385 = vmatprep.subr.bf16.mxu0 %v630_v1 }
  0x23   : > { %386 = vmatpush1.bf16.msra.mxu0 %v614_v9 }
  0x24   : > { %387 = vmatprep.subr.bf16.mxu0 %v630_v1 }
  0x27   : > { %388 = vmatpush1.bf16.msra.mxu0 %v615_v10 }
  0x28   : > { %389 = vmatprep.subr.bf16.mxu0 %v630_v1 }
  0x2b   : > { %390 = vmatpush1.bf16.msra.mxu0 %v616_v11 }
  0x2c   : > { %391 = vmatprep.subr.bf16.mxu0 %v630_v1 }
  0x2f   : > { %392 = vmatpush1.bf16.msra.mxu0 %v617_v12 }
  0x30   : > { %393 = vmatprep.subr.bf16.mxu0 %v630_v1 }
  0x33   : > { %394 = vmatpush1.bf16.msra.mxu0 %v618_v13 }
  0x36   : > { %404 = vmatmul.mubr.bf16.vlgmr.msra.gmra.mrb[0].mxu0 %v619_v14 }
 0x109   : > { %v405_v16 = vpop.f32.mrb[0].mxu0 }
 0x10a   : > { %v406_v17 = vadd.f32 %v570_v15, %v405_v16  ;;  %v407_v18 = vpop.f32.mrb[1].mxu0 }
 0x10b   : > { %v408_v19 = vpop.f32.mrb[2].mxu0 }
 0x10c   : > { %v409_v20 = vadd.f32 %v570_v15, %v408_v19  ;;  %v410_v21 = vpop.f32.mrb[3].mxu0  ;;  %v430_v22 = vmul.f32 %v406_v17, %v406_v17 }
 0x10e   : > { %v596_v23 = vpack.c.bf16 %v409_v20, %v406_v17  ;;  %v422_v24 = vadd.f32 %v409_v20, %v406_v17  ;;  %v431_v25 = vmul.f32 %v409_v20, %v409_v20 }
 0x110   : > { %597 = vst [vmem:[%s242_s8] sm:$0xff] %v596_v23   ;;  %v423_v26 = vrot.slane %v422_v24, 4  ;;  %v432_v27 = vadd.f32 %v431_v25, %v430_v22 }
 0x112   : > { %v424_v28 = vadd.f32 %v423_v26, %v422_v24  ;;  %v433_v29 = vrot.slane %v432_v27, 4 }
 0x114   : > { %v425_v30 = vrot.slane %v424_v28, 2  ;;  %v434_v31 = vadd.f32 %v433_v29, %v432_v27 }
 0x116   : > { %v426_v32 = vadd.f32 %v425_v30, %v424_v28  ;;  %v435_v33 = vrot.slane %v434_v31, 2 }
 0x118   : > { %v427_v34 = vrot.slane %v426_v32, 1  ;;  %v436_v35 = vadd.f32 %v435_v33, %v434_v31 }
 0x11a   : > { %v428_v36 = vadd.f32 %v427_v34, %v426_v32  ;;  %v437_v37 = vrot.slane %v436_v35, 1 }
 0x11c   : > { %429 = vst [vmem:[%s247_s10] sm:$0xff] %v428_v36  ;;  %v438_v38 = vadd.f32 %v437_v37, %v436_v35 }
 0x11e   : > { %439 = vst [vmem:[%s251_s13] sm:$0xff] %v438_v38 }
 0x11f PF: > { %s16_s18 = sadd.s32 1, %s628_s18  }
 0x120   : > { %p13_p5 = scmp.ge.s32.totalorder %s16_s18, 4  }
 0x122   :  { %15 = sbr.rel (!%p13_p5) target bundleno = 1 (0x1), region = 86 }

</bundles_post_ra>
